<compile_context>
chip_gen: v7x
topology: tpu7x:2x2x1
jax: 0.10.0
libtpu: 0.0.40
codegen_flags: <defaults>
</compile_context>

<pallas_src>
import numpy as np

import jax
import jax.numpy as jnp
from jax.experimental import pallas as pl
from jax.experimental.pallas import tpu as pltpu

_LANES = 128          # TPU lane width; 128 original rows per lane-dense view-row.
_FEATURES = 2         # FixedNN input feature count.

# Folded weight: W[2j + f, j] = [1.0, 2.0][f]; zero elsewhere.  Values {0,1,2}
# are exact in bf16, so the bf16 copy used by the kernel loses nothing.
_W_SMALL = np.array([[1.0], [2.0]], dtype=np.float32)                    # (2, 1)
_W_FOLDED = np.kron(np.eye(_LANES, dtype=np.float32), _W_SMALL)          # (256, 128)


def _cdiv(a: int, b: int) -> int:
    return -(-a // b)


def _round_up(a: int, b: int) -> int:
    return _cdiv(a, b) * b


def _fixed_nn_kernel(x_ref, w_ref, o_ref):
    # x_ref: (TM, 256) f32 lane-dense view of 128*TM input rows
    # w_ref: (256, 128) bf16 folded weight (exact; resident across the grid)
    # o_ref: (TM, 128) f32 lane-dense outputs
    x = x_ref[...]
    w = w_ref[...]
    # Manual hi/lo split: 2 bf16 MXU passes instead of a 6-pass f32 matmul.
    # Since w is exact in bf16, this is equivalent to >=16-bit-mantissa accuracy.
    x_hi = x.astype(jnp.bfloat16)
    x_lo = (x - x_hi.astype(jnp.float32)).astype(jnp.bfloat16)
    o_ref[...] = (
        jnp.dot(x_hi, w, preferred_element_type=jnp.float32)
        + jnp.dot(x_lo, w, preferred_element_type=jnp.float32)
    )


def _xla_forward(x2d: jax.Array) -> jax.Array:
    """Pinned full-precision (2->1) matmul for tiny inputs and ragged tails."""
    w = jnp.asarray(_W_SMALL)
    return jnp.dot(
        x2d, w,
        precision=jax.lax.Precision.HIGHEST,
        preferred_element_type=jnp.float32,
    )


def fixed_nn_forward(x: jax.Array, *, tm: int = 4096) -> jax.Array:
    """Equivalent of FixedNN().forward(x) for x with trailing dim 2."""
    assert x.shape[-1] == _FEATURES, "FixedNN expects last dim == 2"
    assert tm >= 8 and tm % 8 == 0, "row tile must be a positive multiple of 8"

    orig_shape = x.shape
    x2d = jnp.asarray(x, jnp.float32).reshape(-1, _FEATURES)
    m = x2d.shape[0]
    mr = m // _LANES                     # full 128-row groups (view-rows)

    # --- tiny-input fast path: pallas_call launch overhead would dominate ----
    if mr < 8:
        return _xla_forward(x2d).reshape(orig_shape[:-1] + (1,))

    m_main = mr * _LANES                 # 128-aligned prefix handled by the kernel

    # Tile selection: ~4 grid steps (even split across v7x's 2 TCs, DMA/compute
    # overlap everywhere), capped at `tm`, always a multiple of 8 sublanes.
    tm_eff = max(8, min(tm, _round_up(_cdiv(mr, 4), 8)))
    grid = (_cdiv(mr, tm_eff),)          # ragged last block: OOB writes are masked

    # Lane-dense view of the aligned prefix.  When m is already 128-aligned this
    # is a pure row-major reshape (no copy); otherwise only the prefix is sliced
    # (no pad-to-tile blowup), and the <=127-row tail goes through XLA below.
    if m_main == m:
        xv = x2d.reshape(mr, _FEATURES * _LANES)
    else:
        xv = x2d[:m_main].reshape(mr, _FEATURES * _LANES)

    w = jnp.asarray(_W_FOLDED, dtype=jnp.bfloat16)   # (256, 128), exact in bf16

    out = pl.pallas_call(
        _fixed_nn_kernel,
        out_shape=jax.ShapeDtypeStruct((mr, _LANES), jnp.float32),
        grid_spec=pltpu.PrefetchScalarGridSpec(
            num_scalar_prefetch=0,
            grid=grid,
            in_specs=[
                pl.BlockSpec((tm_eff, _FEATURES * _LANES), lambda i: (i, 0)),
                # Constant block index -> weight DMA'd once, stays resident.
                pl.BlockSpec((_FEATURES * _LANES, _LANES), lambda i: (0, 0)),
            ],
            out_specs=pl.BlockSpec((tm_eff, _LANES), lambda i: (i, 0)),
        ),
        compiler_params=pltpu.CompilerParams(
            dimension_semantics=("parallel",),
            # TM=4096: ~12 MiB double-buffered blocks + ~12 MiB kernel temporaries.
            # 36 MiB clears v5e's 16 MiB scoped default and stays well under
            # v7x's 64 MiB per-TC physical VMEM.
            vmem_limit_bytes=36 << 20,
        ),
    )(xv, w)

    # Row-major flatten of (mr, 128) restores original row order; free reshape.
    main_flat = out.reshape(m_main, 1)
    if m_main == m:
        return main_flat.reshape(orig_shape[:-1] + (1,))

    tail_out = _xla_forward(x2d[m_main:])            # <=127 rows, tiny
    full = jnp.concatenate([main_flat, tail_out], axis=0)
    return full.reshape(orig_shape[:-1] + (1,))


if __name__ == "__main__":
    key = jax.random.PRNGKey(0)
    k1, k2, k3 = jax.random.split(key, 3)

    def reference(xx):
        xx = jnp.asarray(xx, jnp.float32)
        return xx[..., 0:1] + 2.0 * xx[..., 1:2]

    # 1) Tiny input matching the original unit test: XLA fast path.
    x_small = jax.random.normal(k1, (8, 2), dtype=jnp.float32)
    y_small = fixed_nn_forward(x_small)
    jax.block_until_ready(y_small)
    assert y_small.shape == (8, 1)
    assert jnp.allclose(y_small, reference(x_small), atol=1e-5)

    # 2) Ragged input: Pallas kernel on the 1920-row aligned prefix
    #    (2 grid steps, ragged last block) + 80-row XLA tail + concat.
    x_big = jax.random.normal(k2, (4, 500, 2), dtype=jnp.float32)     # M = 2000
    y_big = fixed_nn_forward(x_big)
    jax.block_until_ready(y_big)
    assert y_big.shape == (4, 500, 1)
    assert jnp.allclose(y_big, reference(x_big), atol=2e-4)           # hi/lo split budget

    # 3) 128-aligned input: Pallas kernel only, 4 even grid steps, zero copies.
    x_med = jax.random.normal(k3, (4096, 2), dtype=jnp.float32)
    y_med = fixed_nn_forward(x_med)
    jax.block_until_ready(y_med)
    assert y_med.shape == (4096, 1)
    assert jnp.allclose(y_med, reference(x_med), atol=2e-4)

    print("KERNEL_OK")
</pallas_src>

<mosaic_0001>
module attributes {stable_mosaic.version = 11 : i64} {
  func.func @_fixed_nn_kernel(%arg0: i32, %arg1: memref<8x256xf32, #tpu.memory_space<vmem>>, %arg2: memref<256x128xbf16, #tpu.memory_space<vmem>>, %arg3: memref<8x128xf32, #tpu.memory_space<vmem>>) attributes {dimension_semantics = [#tpu.dimension_semantics<parallel>], iteration_bounds = array<i64: 2>, scalar_prefetch = 0 : i64, scratch_operands = 0 : i64, tpu.core_type = #tpu.core_type<tc>, window_params = [{transform_indices = @transform_0, window_bounds = array<i64: 8, 256>}, {pipeline_mode = #tpu.pipeline_mode<synchronous>, transform_indices = @transform_1, window_bounds = array<i64: 256, 128>}, {transform_indices = @transform_2, window_bounds = array<i64: 8, 128>}]} {
    %c0 = arith.constant 0 : index
    %c0_0 = arith.constant 0 : index
    %0 = vector.load %arg1[%c0, %c0_0] : memref<8x256xf32, #tpu.memory_space<vmem>>, vector<8x256xf32>
    %c0_1 = arith.constant 0 : index
    %c0_2 = arith.constant 0 : index
    %1 = vector.load %arg2[%c0_1, %c0_2] : memref<256x128xbf16, #tpu.memory_space<vmem>>, vector<256x128xbf16>
    %2 = arith.truncf %0 : vector<8x256xf32> to vector<8x256xbf16>
    %3 = arith.extf %2 : vector<8x256xbf16> to vector<8x256xf32>
    %4 = arith.subf %0, %3 : vector<8x256xf32>
    %5 = arith.truncf %4 : vector<8x256xf32> to vector<8x256xbf16>
    %cst = arith.constant dense<0.000000e+00> : vector<8x128xf32>
    %6 = tpu.matmul %2, %1, %cst {dimension_numbers = #tpu.dot_dimension_numbers<[1], [0], [0], [1], [0, 0, 1, 1], [], []>} : vector<8x256xbf16>, vector<256x128xbf16>, vector<8x128xf32> -> vector<8x128xf32>
    %cst_3 = arith.constant dense<0.000000e+00> : vector<8x128xf32>
    %7 = tpu.matmul %5, %1, %cst_3 {dimension_numbers = #tpu.dot_dimension_numbers<[1], [0], [0], [1], [0, 0, 1, 1], [], []>} : vector<8x256xbf16>, vector<256x128xbf16>, vector<8x128xf32> -> vector<8x128xf32>
    %8 = arith.addf %6, %7 : vector<8x128xf32>
    %c0_4 = arith.constant 0 : index
    %c0_5 = arith.constant 0 : index
    %9 = vector.load %arg3[%c0_4, %c0_5] : memref<8x128xf32, #tpu.memory_space<vmem>>, vector<8x128xf32>
    tpu.vector_store %arg3[%c0_4, %c0_5], %8 {strides = array<i32>} : memref<8x128xf32, #tpu.memory_space<vmem>>, vector<8x128xf32>,
    return
  }
  func.func @transform_0(%arg0: i32) -> (i32, i32) {
    %c0_i32 = arith.constant 0 : i32
    %c0_i32_0 = arith.constant 0 : i32
    return %arg0, %c0_i32 : i32, i32
  }
  func.func @transform_1(%arg0: i32) -> (i32, i32) {
    %c0_i32 = arith.constant 0 : i32
    %c0_i32_0 = arith.constant 0 : i32
    %c0_i32_1 = arith.constant 0 : i32
    return %c0_i32, %c0_i32_0 : i32, i32
  }
  func.func @transform_2(%arg0: i32) -> (i32, i32) {
    %c0_i32 = arith.constant 0 : i32
    %c0_i32_0 = arith.constant 0 : i32
    return %arg0, %c0_i32 : i32, i32
  }
}

</mosaic_0001>

<bundles_post_ra>
// kernel: tpu_custom_call.1
= control target key start
LH: loop header
LB: loop body
LE: loop exit
PB: predicated region body
PF: predicated region fallthrough
CT: control target
= control target key end

     0   :  { %7 = vsyncpa [#allocation3], 0  ;;  %s991_s0 = inlined_call_operand.hbm [shape: f32[15,256], index: 0, kind: input, shape index: {}]   ;;  %s992_s1 = inlined_call_operand.hbm [shape: bf16[256,128], index: 1, kind: input, shape index: {}]   ;;  %s993_s2 = inlined_call_operand.hbm [shape: f32[15,128], index: 2, kind: output, shape index: {}]  }
   0x1   :  { %9 = vsyncpa [#allocation3 + $0x1], 0 }
   0x2   :  { %10 = vsyncpa [#allocation6], 0 }
   0x3   :  { %11 = vsyncpa [#allocation4], 0 }
   0x4   :  { %13 = vsyncpa [#allocation4 + $0x1], 0  ;;  %s790_s9 = smov 0   ;;  %s792_s10 = smov 0  }
   0x5   :  { %s794_s11 = smov 0   ;;  %s796_s12 = smov 0  }
   0x6 LB: > { %s811_s13 = sadd.s32 4294967295, %s768_s12   ;;  %s489_s14 = sadd.s32 4294967294, %s768_s12   ;;  %s768_s12 = sphi %s796_s12, %s1013_s12   ;;  %s764_s11 = sphi %s794_s11, %s1012_s11   ;;  %s760_s10 = sphi %s792_s10, %s1011_s10   ;;  %s756_s9 = sphi %s790_s9, %s1010_s9  }
   0x7   : > { %p39_p0 = scmp.ne.s32.totalorder %s760_s10, %s756_s9  ;;  %p994_p1 = scmp.eq.s32.totalorder %s811_s13, 0 }
   0x8   : > { %p90_p3 = scmp.eq.s32.totalorder %s489_s14, 1  ;;  %p490_p5 = scmp.ge.s32.totalorder %s768_s12, 1 }
   0x9   : > { %p820_p4 = por %p994_p1, %p39_p0  ;;  %p97_p7 = scmp.lt.s32.totalorder %s768_s12, 3 }
   0xa   : > { %p825_p6 = por %p90_p3, %p39_p0  ;;  %s770_s18 = smov [#allocation5]  }
   0xb   : > { %s997_s15 = scalar_select %p820_p4, 1, 0 }
   0xc   : > { %s998_s16 = scalar_select %p825_p6, 1, 0 }
   0xd   : > { %p830_p8 = pnand %p490_p5, %p97_p7  ;;  %s109_s19 = sshll.u32 %s770_s18, 4  ;;  %s834_s19 = int_to_ptr.vmem [resolvable:$true] %s109_s19 }
   0xe   : > { %s846_s21 = sadd.s32 1, %s768_s12   ;;  %s26_s22 = sadd.s32 1, %s764_s11 }
   0xf   : > { %s999_s17 = scalar_select %p830_p8, 1, 0 }
  0x10   : > { %p573_p9 = pneg %p830_p8  ;;  %s23_s23 = ssub.s32 %s768_s12, %s846_s21 }
  0x11   : > { %s640_s26 = scalar_lea.hbm %s992_s1, 2048 }
  0x12   : > { %p841_p11 = pnand %p573_p9, %p994_p1  ;;  %p641_p12 = scmp.ne.s32.totalorder %s992_s1, %s640_s26 }
  0x13   : > { %p647_p5 = scmp.lt.u32.totalorder %s640_s26, %s992_s1 }
  0x14   : > { %p642_p13 = pneg %p841_p11 }
  0x16   : > { %p643_p0 = pnand %p642_p13, %p641_p12 }
  0x18   : > { %p644_p3 = pneg %p643_p0 }
  0x1a   : > { %p649_p7 = pnand %p647_p5, %p644_p3 }
  0x1c   : > { %652 = shalt.err (!%p649_p7)
}
  0x1d   : > { %s653_s3 = scalar_lea.vmem %s834_s19, 2048  ;;  %p661_p2 = scmp.lt.s32.totalorder %s834_s19, %s834_s19 }
  0x1e   : > { %p654_p9 = scmp.ne.s32.totalorder %s834_s19, %s653_s3  ;;  %p662_p6 = scmp.lt.s32.totalorder %s653_s3, %s653_s3 }
  0x20   : > { %p656_p10 = pnand %p654_p9, %p642_p13  ;;  %p663_p4 = por %p662_p6, %p661_p2 }
  0x22   : > { %p657_p1 = pneg %p656_p10 }
  0x24   : > { %p664_p8 = pnand %p663_p4, %p657_p1 }
  0x26   : > { %667 = shalt.err (!%p664_p8)
}
  0x27   : > { %s771_s4 = smov 64   ;;  %s772_s5 = smov 4  }
  0x28   : > { %576 = dma.hbm_to_vmem [thread:$0]  (!%p841_p11), %s992_s1, 2048, %s834_s19, [#allocation6], %s771_s4, %s771_s4, %s772_s5  }
  0x29   : > { %p24_p2 = scmp.eq.s32.totalorder %s23_s23, 0  ;;  %p33_p1 = scmp.ne.s32.totalorder %s764_s11, %s760_s10 }
  0x2a   : > { %p34_p4 = scmp.eq.s32.totalorder %s768_s12, 0  ;;  %p586_p6 = scmp.lt.s32.totalorder %s768_s12, 2 }
  0x2b   : > { %s877_s8 = scalar_select %p24_p2, %s764_s11, %s26_s22  }
  0x2c   : > { %p35_p8 = por %p34_p4, %p33_p1  ;;  %p1001_p10 = scmp.eq.s32.totalorder %s811_s13, 1 }
  0x2d   : > { %s123_s18 = sand.u32 1, %s764_s11   ;;  %s520_s24 = sshll.u32 %s768_s12, 8 }
  0x2e   : > { %p881_p12 = por %p1001_p10, %p33_p1  ;;  %s493_s25 = sshll.u32 %s123_s18, 4 }
  0x2f   : > { %s890_s27 = scalar_lea.hbm %s991_s0, %s520_s24  ;;  %s127_s19 = scalar_lea.vmem [#allocation2], %s493_s25 }
  0x30   : > { %s135_s22 = sshll.u32 %s127_s19, 4  ;;  %p892_p11 = pnand %p586_p6, %p35_p8  ;;  %s896_s22 = int_to_ptr.vmem [resolvable:$true] %s135_s22 }
  0x31   : > { %s124_s28 = scalar_lea.sflag [#allocation3], %s123_s18  ;;  %s668_s29 = scalar_lea.hbm %s890_s27, 256 }
  0x32   : > { %p669_p13 = scmp.ne.s32.totalorder %s890_s27, %s668_s29  ;;  %p670_p0 = pneg %p892_p11 }
  0x33   : > { %s673_s4 = scalar_lea.hbm %s991_s0, 512  ;;  %p674_p7 = scmp.lt.u32.totalorder %s890_s27, %s991_s0 }
  0x34   : > { %p671_p3 = pnand %p670_p0, %p669_p13  ;;  %p675_p9 = scmp.lt.u32.totalorder %s673_s4, %s668_s29 }
  0x35   : > { %p677_p1 = scmp.lt.u32.totalorder %s668_s29, %s890_s27 }
  0x36   : > { %p672_p5 = pneg %p671_p3  ;;  %p676_p2 = por %p675_p9, %p674_p7 }
  0x38   : > { %p678_p4 = por %p677_p1, %p676_p2 }
  0x3a   : > { %p679_p6 = pnand %p678_p4, %p672_p5 }
  0x3c   : > { %682 = shalt.err (!%p679_p6)
}
  0x3d   : > { %s683_s7 = scalar_lea.vmem %s896_s22, 256  ;;  %s773_s18 = smov [#allocation2]  }
  0x3e   : > { %p684_p8 = scmp.ne.s32.totalorder %s896_s22, %s683_s7  ;;  %s688_s24 = sshll.u32 %s773_s18, 4  ;;  %s689_s24 = int_to_ptr.vmem [resolvable:$false] %s688_s24 }
  0x3f   : > { %s690_s25 = scalar_lea.vmem %s689_s24, 512  ;;  %p691_p3 = scmp.lt.s32.totalorder %s896_s22, %s689_s24 }
  0x40   : > { %p686_p10 = pnand %p684_p8, %p670_p0  ;;  %p692_p7 = scmp.lt.s32.totalorder %s690_s25, %s683_s7 }
  0x42   : > { %p687_p13 = pneg %p686_p10  ;;  %p693_p9 = por %p692_p7, %p691_p3 }
  0x44   : > { %p694_p2 = pnand %p693_p9, %p687_p13 }
  0x46   : > { %697 = shalt.err (!%p694_p2)
}
  0x47   : > { %580 = dma.hbm_to_vmem [thread:$0]  (!%p892_p11), %s890_s27, 256, %s896_s22, %s124_s28  }
  0x48   : > { %p1004_p5 = scmp.ne.s32.totalorder %s999_s17, 0 }
  0x49   : > { %s926_s20 = sand.u32 (!%p1004_p5), 1, %s760_s10   ;;  %p1005_p0 = scmp.ne.s32.totalorder (!%p1004_p5), %s997_s15, 0 }
  0x4a   : > { %144 = sbr.rel (%p1004_p5) target bundleno = 349 (0x15d), region = 28  ;;  %s497_s26 = sshll.u32 (!%p1004_p5), %s926_s20, 4 }
  0x4b   : > { %s147_s19 = scalar_lea.sflag (!%p1004_p5), [#allocation3], %s926_s20  ;;  %s930_s29 = scalar_lea.vmem (!%p1004_p5), [#allocation2], %s497_s26 }
  0x51   : > { %743 = dma.done.wait (%p1005_p0), %s147_s19, 256  }
  0x52   : > { %745 = vsyncadd (%p1005_p0), %s147_s19, 4294967040  ;;  %p1006_p11 = scmp.eq.s32.totalorder %s811_s13, 0 }
  0x54   : > { %747 = dma.done.wait (%p1006_p11), [#allocation6], 2048   ;;  %p1007_p1 = pmov %p1006_p11 }
  0x55   : > { %v624_v0 = vld [vmem:[#allocation5 + $0x40] sm:$0xff]   ;;  %v626_v2 = vld [vmem:[#allocation5 + $0x48] sm:$0xff]   ;;  %v628_v4 = vld [vmem:[#allocation5 + $0x50] sm:$0xff]   ;;  %s499_s15 = sshll.u32 %s926_s20, 3  ;;  %s517_s17 = sshll.u32 %s811_s13, 7 }
  0x56   : > { %749 = vsyncadd (%p1007_p1), [#allocation6], 4294965248  ;;  %v625_v1 = vld [vmem:[#allocation5] sm:$0xff]   ;;  %521 = vmatprep.subr.bf16.mxu0 %v624_v0  ;;  %543 = vmatprep.subr.bf16.mxu1 %v624_v0  ;;  %v627_v3 = vld [vmem:[#allocation5 + $0x8] sm:$0xff]   ;;  %s174_s27 = scalar_lea.vmem [#allocation7], %s499_s15  ;;  %s947_s30 = scalar_lea.hbm %s993_s2, %s517_s17 }
  0x57   : > { %522 = vmatpush3.bf16.msra.mxu0 %v625_v1  ;;  %544 = vmatpush3.bf16.msra.mxu1 %v625_v1  ;;  %v629_v5 = vld [vmem:[#allocation5 + $0x10] sm:$0xff]   ;;  %v630_v6 = vld [vmem:[#allocation5 + $0x58] sm:$0xff]   ;;  %v632_v8 = vld [vmem:[#allocation5 + $0x60] sm:$0xff]   ;;  %s409_s22 = sshll.u32 %s174_s27, 4  ;;  %s396_s13 = scalar_lea.sflag [#allocation4], %s926_s20  ;;  %s949_s22 = int_to_ptr.vmem [resolvable:$true] %s409_s22 }
  0x58   : > { %523 = vmatprep.subr.bf16.mxu0 %v626_v2  ;;  %545 = vmatprep.subr.bf16.mxu1 %v626_v2  ;;  %v631_v7 = vld [vmem:[#allocation5 + $0x18] sm:$0xff]   ;;  %v633_v9 = vld [vmem:[#allocation5 + $0x20] sm:$0xff]   ;;  %v634_v10 = vld [vmem:[#allocation5 + $0x68] sm:$0xff]   ;;  %s698_s3 = scalar_lea.vmem %s949_s22, 128  ;;  %s774_s4 = smov [#allocation7]  }
  0x59   : > { %v177_v11 = vld [vmem:[%s930_s29 + $0x8] sm:$0xff]  ;;  %v176_v12 = vld [vmem:[%s930_s29] sm:$0xff]  ;;  %p699_p4 = scmp.ne.s32.totalorder %s949_s22, %s698_s3  ;;  %s702_s5 = sshll.u32 %s774_s4, 4  ;;  %s703_s5 = int_to_ptr.vmem [resolvable:$false] %s702_s5 }
  0x5a   : > { %v211_v13 = vpack.c.bf16 %v177_v11, %v177_v11  ;;  %v210_v14 = vpack.c.bf16 %v176_v12, %v176_v12  ;;  %v635_v15 = vld [vmem:[#allocation5 + $0x28] sm:$0xff]   ;;  %v636_v17 = vld [vmem:[#allocation5 + $0x70] sm:$0xff]   ;;  %v638_v22 = vld [vmem:[#allocation5 + $0x78] sm:$0xff]   ;;  %s704_s6 = scalar_lea.vmem %s703_s5, 256  ;;  %p705_p10 = scmp.lt.s32.totalorder %s949_s22, %s703_s5 }
  0x5b   : > { %524 = vmatpush3.bf16.msra.mxu0 %v627_v3  ;;  %546 = vmatpush3.bf16.msra.mxu1 %v627_v3  ;;  %v637_v20 = vld [vmem:[#allocation5 + $0x30] sm:$0xff]   ;;  %v639_v24 = vld [vmem:[#allocation5 + $0x38] sm:$0xff]   ;;  %p700_p6 = pnand %p699_p4, %p881_p12  ;;  %p706_p13 = scmp.lt.s32.totalorder %s704_s6, %s698_s3 }
  0x5c   : > { %525 = vmatprep.subr.bf16.mxu0 %v628_v4  ;;  %547 = vmatprep.subr.bf16.mxu1 %v628_v4  ;;  %v213_v16 = vunpack.c.l.bf16 %v211_v13  ;;  %v212_v19 = vunpack.c.l.bf16 %v210_v14 }
  0x5d   : > { %386 = vmatprep.mubr.bf16.mxu1 %v211_v13  ;;  %p701_p8 = pneg %p700_p6  ;;  %p707_p3 = por %p706_p13, %p705_p10 }
  0x5e   : > { %v215_v18 = vsub.f32 %v177_v11, %v213_v16  ;;  %v214_v23 = vsub.f32 %v176_v12, %v212_v19 }
  0x5f   : > { %526 = vmatpush3.bf16.msra.mxu0 %v629_v5  ;;  %548 = vmatpush3.bf16.msra.mxu1 %v629_v5  ;;  %p708_p7 = pnand %p707_p3, %p701_p8 }
  0x60   : > { %527 = vmatprep.subr.bf16.mxu0 %v630_v6  ;;  %549 = vmatprep.subr.bf16.mxu1 %v630_v6  ;;  %v217_v21 = vpack.c.bf16 %v215_v18, %v215_v18  ;;  %v216_v25 = vpack.c.bf16 %v214_v23, %v214_v23 }
  0x62   : > { %346 = vmatprep.mubr.bf16.mxu0 %v217_v21 }
  0x63   : > { %528 = vmatpush3.bf16.msra.mxu0 %v631_v7  ;;  %550 = vmatpush3.bf16.msra.mxu1 %v631_v7 }
  0x64   : > { %529 = vmatprep.subr.bf16.mxu0 %v632_v8  ;;  %551 = vmatprep.subr.bf16.mxu1 %v632_v8 }
  0x67   : > { %530 = vmatpush3.bf16.msra.mxu0 %v633_v9  ;;  %552 = vmatpush3.bf16.msra.mxu1 %v633_v9 }
  0x68   : > { %531 = vmatprep.subr.bf16.mxu0 %v634_v10  ;;  %553 = vmatprep.subr.bf16.mxu1 %v634_v10 }
  0x6b   : > { %532 = vmatpush3.bf16.msra.mxu0 %v635_v15  ;;  %554 = vmatpush3.bf16.msra.mxu1 %v635_v15 }
  0x6c   : > { %533 = vmatprep.subr.bf16.mxu0 %v636_v17  ;;  %555 = vmatprep.subr.bf16.mxu1 %v636_v17 }
  0x6f   : > { %534 = vmatpush3.bf16.msra.mxu0 %v637_v20  ;;  %556 = vmatpush3.bf16.msra.mxu1 %v637_v20 }
  0x70   : > { %535 = vmatprep.subr.bf16.mxu0 %v638_v22  ;;  %557 = vmatprep.subr.bf16.mxu1 %v638_v22 }
  0x73   : > { %536 = vmatpush3.bf16.msra.mxu0 %v639_v24  ;;  %558 = vmatpush3.bf16.msra.mxu1 %v639_v24 }
  0x76   : > { %347 = vmatmul.mubr.bf16.vlgmr.msra.gmra.mrb[0].mxu0 %v216_v25  ;;  %387 = vmatmul.mubr.bf16.vlgmr.msra.gmra.mrb[0].mxu1 %v210_v14 }
 0x149   : > { %v537_v26 = vpop.f32.mrb[0].mxu0  ;;  %v559_v27 = vpop.f32.mrb[0].mxu1 }
 0x14a   : > { %v538_v28 = vpop.f32.mrb[1].mxu0  ;;  %v560_v29 = vpop.f32.mrb[1].mxu1 }
 0x14b   : > { %v539_v30 = vadd.f32 %v538_v28, %v537_v26  ;;  %v561_v31 = vadd.f32 %v560_v29, %v559_v27  ;;  %v540_v32 = vpop.f32.mrb[2].mxu0  ;;  %v562_v33 = vpop.f32.mrb[2].mxu1 }
 0x14c   : > { %v541_v34 = vpop.f32.mrb[3].mxu0  ;;  %v563_v35 = vpop.f32.mrb[3].mxu1 }
 0x14d   : > { %v389_v36 = vadd.f32 %v561_v31, %v539_v30 }
 0x14f   : > { %394 = vst [vmem:[%s174_s27] sm:$0xff] %v389_v36 }
 0x150   : > { %711 = shalt.err (!%p708_p7)
}
 0x151   : > { %s712_s7 = scalar_lea.hbm %s947_s30, 128  ;;  %s716_s25 = scalar_lea.hbm %s993_s2, 256 }
 0x152   : > { %p713_p9 = scmp.ne.s32.totalorder %s947_s30, %s712_s7  ;;  %p717_p0 = scmp.lt.u32.totalorder %s947_s30, %s993_s2 }
 0x153   : > { %p718_p11 = scmp.lt.u32.totalorder %s716_s25, %s712_s7  ;;  %p720_p4 = scmp.lt.u32.totalorder %s712_s7, %s947_s30 }
 0x154   : > { %p714_p2 = pnand %p713_p9, %p881_p12 }
 0x155   : > { %p719_p1 = por %p718_p11, %p717_p0 }
 0x156   : > { %p715_p5 = pneg %p714_p2 }
 0x157   : > { %p721_p6 = por %p720_p4, %p719_p1 }
 0x159   : > { %p722_p8 = pnand %p721_p6, %p715_p5 }
 0x15b   : > { %725 = shalt.err (!%p722_p8)
}
 0x15c   : > { %571 = dma.vmem_to_hbm [thread:$0]  (%p881_p12), %s949_s22, 128, %s947_s30, %s396_s13  }
 0x15d PF: > { %s421_s19 = sand.u32 1, %s756_s9   ;;  %p1008_p10 = scmp.ne.s32.totalorder %s998_s16, 0 }
 0x15e   : > { %p1009_p13 = scmp.ge.s32.totalorder %s768_s12, 2  ;;  %s422_s29 = scalar_lea.sflag [#allocation4], %s421_s19 }
 0x160   : > { %p582_p3 = pnand %p1009_p13, %p1008_p10 }
 0x162   : > { %751 = dma.done.wait (!%p582_p3), %s422_s29, 128  }
 0x163   : > { %753 = vsyncadd (!%p582_p3), %s422_s29, 4294967168  ;;  %p16_p7 = scmp.ge.s32.totalorder %s846_s21, 4   ;;  %s1010_s9 = smov %s760_s10 }
 0x164   : > { %s1011_s10 = smov %s764_s11  ;;  %s1012_s11 = smov %s877_s8 }
 0x165   : > { %s1013_s12 = smov %s846_s21  ;;  %18 = sbr.rel (!%p16_p7) target bundleno = 6 (0x6), region = 77 }
 0x16c   :  { %427 = vsyncpa [#allocation3], 1 }
 0x16d   :  { %429 = vsyncpa [#allocation3 + $0x1], 1 }
 0x16e   :  { %430 = vsyncpa [#allocation6], 1 }
 0x16f   :  { %431 = vsyncpa [#allocation4], 1 }
 0x170   :  { %433 = vsyncpa [#allocation4 + $0x1], 1 }

</bundles_post_ra>
